<compile_context>
chip_gen: v7x
topology: tpu7x:2x2x1
jax: 0.10.0
libtpu: 0.0.40
codegen_flags: <defaults>
</compile_context>

<pallas_src>
import functools

import jax
import jax.numpy as jnp
from jax.experimental import pallas as pl
from jax.experimental.pallas import tpu as pltpu

ACTION_SPACE = 9
IN_FEATURES = 56
HIDDEN = 16
HEAD_DIM = 1 + ACTION_SPACE          # value + 9 logits
SLAB = HEAD_DIM + 1                  # value | 9 masked logits | action  (11 lanes)
_U_COL = HEAD_DIM                    # lane 10: carries the uniform in, the action out


def _grid_shooting_kernel(obs_ref, aux_ref, w_ref, b_ref, tri_ref, out_ref):
    tb = obs_ref.shape[0]

    x = obs_ref[...]
    if x.dtype != jnp.float32:       # static (trace-time) branch; lets obs arrive as bf16
        x = x.astype(jnp.float32)

    # One fused matmul padded to SLAB lanes, plus the aux stream:
    #   fused col 0 = value, cols 1..9 = masked logits, col 10 = uniform u.
    fused = (jnp.dot(x, w_ref[...], preferred_element_type=jnp.float32)
             + b_ref[...] + aux_ref[...])                                   # [TB, 11]

    logits = fused[:, 1:1 + ACTION_SPACE]                                   # [TB, 9]
    u = fused[:, _U_COL:_U_COL + 1]                                         # [TB, 1]

    # Numerically stable exp; masked entries underflow to exactly 0.
    m = jnp.max(logits, axis=1, keepdims=True)
    e = jnp.exp(logits - m)                                                 # [TB, 9]

    # Unnormalized inverse-CDF sampling (no softmax normalization needed):
    #   cum[:, j] = sum_{i <= j} e[:, i]  (tiny MXU matmul); last column == sum(e).
    cum = jnp.dot(e, tri_ref[...], preferred_element_type=jnp.float32)      # [TB, 9]
    total = cum[:, ACTION_SPACE - 1:ACTION_SPACE]                           # [TB, 1]
    thresh = u * total                                                      # [TB, 1]
    # "cum == 0" skips a zero-probability prefix (u == 0 edge case).  The
    # predicate is monotone along the CDF, so the count is always in [0, 8]
    # and can never land on a masked action (given >= 1 valid action).
    picked = jnp.logical_or(cum < thresh, cum == 0.0)
    action_f = jnp.sum(picked.astype(jnp.float32), axis=1, keepdims=True)   # [TB, 1]

    # Single dense store: overwrite lane 10 (held u) with the sampled action.
    col = jax.lax.broadcasted_iota(jnp.int32, (tb, SLAB), 1)
    out_ref[...] = jnp.where(col == _U_COL, action_f, fused)


def _round_up(x, m):
    return ((x + m - 1) // m) * m


@functools.partial(jax.jit, static_argnames=("block_b",))
def grid_shooting_forward(obs, action_mask, uniforms, params, *, block_b=8192):
    """Forward pass of GridShootingModel.

    obs:         [B, 56] f32 (or bf16)
    action_mask: [B, 9]  f32 (1.0 = valid action)
    uniforms:    [B, 1]  f32 in [0, 1) -- stand-in for torch.multinomial's RNG
    Returns (values [B] f32, masked_logits [B, 9] f32, actions [B] int32).
    """
    B = obs.shape[0]
    w1, b1, w2, b2, w3, b3 = params

    # Fold the whole network into a single matmul (exact: no activation between
    # base_net and the heads), padded to SLAB columns (col 10 is zero).
    w_heads = jnp.concatenate([w2, w3], axis=1)                    # [16, 10]
    b_heads = jnp.concatenate([b2, b3], axis=1)                    # [1, 10]
    w_eff = jnp.pad(w1 @ w_heads, ((0, 0), (0, SLAB - HEAD_DIM)))  # [56, 11]
    b_eff = jnp.pad(b1 @ w_heads + b_heads,
                    ((0, 0), (0, SLAB - HEAD_DIM)))                # [1, 11]

    # Inclusive upper-triangular ones: cumulative sum as a tiny MXU matmul.
    tri = jnp.triu(jnp.ones((ACTION_SPACE, ACTION_SPACE), jnp.float32))

    # Merge mask + uniforms into one aux stream: 0 | -(1-mask)*1e5 | u.
    # (Ideally produced in this layout upstream; the concat is a cheap
    # elementwise op that XLA can fuse with the mask/uniform producers.)
    aux = jnp.concatenate([
        jnp.zeros((B, 1), jnp.float32),
        (action_mask.astype(jnp.float32) - 1.0) * 100000.0,
        uniforms.astype(jnp.float32),
    ], axis=1)                                                     # [B, 11]

    # Batch tiling: TB rows per grid step (multiple of 16, bf16-friendly).
    # Guarantee >= 2 grid steps when B allows it so both v7x TensorCores engage.
    tb = max(16, min(block_b, _round_up(max((B + 1) // 2, 1), 16)))
    b_pad = _round_up(B, tb)
    if b_pad != B:
        pad = b_pad - B
        obs = jnp.pad(obs, ((0, pad), (0, 0)))
        aux = jnp.pad(aux, ((0, pad), (0, 0)))

    batch_spec = lambda w: pl.BlockSpec((tb, w), lambda i: (i, 0))
    const_spec = lambda s: pl.BlockSpec(s, lambda i: (0, 0))   # stays VMEM-resident

    slab = pl.pallas_call(
        _grid_shooting_kernel,
        out_shape=jax.ShapeDtypeStruct((b_pad, SLAB), jnp.float32),
        grid=(b_pad // tb,),
        in_specs=[
            batch_spec(IN_FEATURES),                    # obs
            batch_spec(SLAB),                           # aux = [0 | -penalty | u]
            const_spec((IN_FEATURES, SLAB)),            # fused weight (padded)
            const_spec((1, SLAB)),                      # fused bias (padded)
            const_spec((ACTION_SPACE, ACTION_SPACE)),   # triangular cumsum matrix
        ],
        out_specs=pl.BlockSpec((tb, SLAB), lambda i: (i, 0)),
        compiler_params=pltpu.CompilerParams(
            dimension_semantics=("parallel",),
            vmem_limit_bytes=32 * 1024 * 1024,
        ),
    )(obs, aux, w_eff, b_eff, tri)

    slab = slab[:B]
    values = slab[:, 0]
    logits = slab[:, 1:1 + ACTION_SPACE]
    actions = slab[:, _U_COL].astype(jnp.int32)
    # TODO(synk): torch.multinomial uses torch's internal RNG stream; here sampling is
    # driven by the explicit `uniforms` input (same distribution, different stream) and
    # actions are int32 instead of torch's int64.
    return values, logits, actions


def init_params(key):
    """Deterministic init mimicking torch.nn.Linear default (uniform +/- 1/sqrt(fan_in)).

    Weights are stored as [in_features, out_features] (transpose of torch layout)."""
    def linear(key, fan_in, fan_out):
        kw, kb = jax.random.split(key)
        bound = 1.0 / jnp.sqrt(float(fan_in))
        w = jax.random.uniform(kw, (fan_in, fan_out), jnp.float32, -bound, bound)
        b = jax.random.uniform(kb, (1, fan_out), jnp.float32, -bound, bound)
        return w, b

    k1, k2, k3 = jax.random.split(key, 3)
    w1, b1 = linear(k1, IN_FEATURES, HIDDEN)
    w2, b2 = linear(k2, HIDDEN, 1)
    w3, b3 = linear(k3, HIDDEN, ACTION_SPACE)
    return (w1, b1, w2, b2, w3, b3)


if __name__ == "__main__":
    key = jax.random.PRNGKey(0)
    k_params, k_obs, k_mask, k_u = jax.random.split(key, 4)

    B = 8
    params = init_params(k_params)

    obs = jax.random.normal(k_obs, (B, IN_FEATURES), jnp.float32)
    action_mask = jax.random.bernoulli(k_mask, 0.7, (B, ACTION_SPACE)).astype(jnp.float32)
    action_mask = action_mask.at[:, 0].set(1.0)      # guarantee a valid action per row
    uniforms = jax.random.uniform(k_u, (B, 1), jnp.float32)

    values, logits, actions = grid_shooting_forward(obs, action_mask, uniforms, params)
    jax.block_until_ready((values, logits, actions))

    # Shape / dtype checks.
    assert values.shape == (B,)
    assert logits.shape == (B, ACTION_SPACE)
    assert actions.shape == (B,) and actions.dtype == jnp.int32

    # Numerical check against an unfused pure-JAX reference (loose tolerance:
    # TPU default-precision matmuls + the exact algebraic fold differ by rounding).
    w1, b1, w2, b2, w3, b3 = params
    h = obs @ w1 + b1
    ref_values = (h @ w2 + b2)[:, 0]
    ref_logits = (h @ w3 + b3) - (1.0 - action_mask) * 100000.0
    assert bool(jnp.allclose(values, ref_values, atol=1e-1, rtol=1e-5))
    assert bool(jnp.allclose(logits, ref_logits, atol=1e-1, rtol=1e-5))

    # Sampled actions must be in range and never on a masked (zero-prob) action.
    assert bool(jnp.all((actions >= 0) & (actions < ACTION_SPACE)))
    assert bool(jnp.all(action_mask[jnp.arange(B), actions] == 1.0))

    print("KERNEL_OK")
</pallas_src>

<mosaic_0001>
module attributes {stable_mosaic.version = 11 : i64} {
  func.func @_grid_shooting_kernel(%arg0: i32, %arg1: memref<16x56xf32, #tpu.memory_space<vmem>>, %arg2: memref<16x11xf32, #tpu.memory_space<vmem>>, %arg3: memref<56x11xf32, #tpu.memory_space<vmem>>, %arg4: memref<1x11xf32, #tpu.memory_space<vmem>>, %arg5: memref<9x9xf32, #tpu.memory_space<vmem>>, %arg6: memref<16x11xf32, #tpu.memory_space<vmem>>) attributes {dimension_semantics = [#tpu.dimension_semantics<parallel>], iteration_bounds = array<i64: 1>, scalar_prefetch = 0 : i64, scratch_operands = 0 : i64, tpu.core_type = #tpu.core_type<tc>, window_params = [{transform_indices = @transform_0, window_bounds = array<i64: 16, 56>}, {transform_indices = @transform_1, window_bounds = array<i64: 16, 11>}, {pipeline_mode = #tpu.pipeline_mode<synchronous>, transform_indices = @transform_2, window_bounds = array<i64: 56, 11>}, {pipeline_mode = #tpu.pipeline_mode<synchronous>, transform_indices = @transform_3, window_bounds = array<i64: 1, 11>}, {pipeline_mode = #tpu.pipeline_mode<synchronous>, transform_indices = @transform_4, window_bounds = array<i64: 9, 9>}, {transform_indices = @transform_5, window_bounds = array<i64: 16, 11>}]} {
    %c0 = arith.constant 0 : index
    %c0_0 = arith.constant 0 : index
    %0 = vector.load %arg1[%c0, %c0_0] : memref<16x56xf32, #tpu.memory_space<vmem>>, vector<16x56xf32>
    %c0_1 = arith.constant 0 : index
    %c0_2 = arith.constant 0 : index
    %1 = vector.load %arg3[%c0_1, %c0_2] : memref<56x11xf32, #tpu.memory_space<vmem>>, vector<56x11xf32>
    %cst = arith.constant dense<0.000000e+00> : vector<16x11xf32>
    %2 = tpu.matmul %0, %1, %cst {dimension_numbers = #tpu.dot_dimension_numbers<[1], [0], [0], [1], [0, 0, 1, 1], [], []>} : vector<16x56xf32>, vector<56x11xf32>, vector<16x11xf32> -> vector<16x11xf32>
    %c0_3 = arith.constant 0 : index
    %c0_4 = arith.constant 0 : index
    %3 = vector.load %arg4[%c0_3, %c0_4] : memref<1x11xf32, #tpu.memory_space<vmem>>, vector<1x11xf32>
    %4 = vector.broadcast %3 : vector<1x11xf32> to vector<16x11xf32>
    %5 = arith.addf %2, %4 : vector<16x11xf32>
    %c0_5 = arith.constant 0 : index
    %c0_6 = arith.constant 0 : index
    %6 = vector.load %arg2[%c0_5, %c0_6] : memref<16x11xf32, #tpu.memory_space<vmem>>, vector<16x11xf32>
    %7 = arith.addf %5, %6 : vector<16x11xf32>
    %8 = vector.extract_strided_slice %7 {offsets = [0, 1], sizes = [16, 9], strides = [1, 1]} : vector<16x11xf32> to vector<16x9xf32>
    %9 = vector.extract_strided_slice %7 {offsets = [0, 10], sizes = [16, 1], strides = [1, 1]} : vector<16x11xf32> to vector<16x1xf32>
    %cst_7 = arith.constant dense<0xFF800000> : vector<16xf32>
    %10 = vector.multi_reduction <maximumf>, %8, %cst_7 [1] : vector<16x9xf32> to vector<16xf32>
    %11 = vector.shape_cast %10 : vector<16xf32> to vector<16x1xf32>
    %12 = vector.broadcast %11 : vector<16x1xf32> to vector<16x9xf32>
    %13 = arith.subf %8, %12 : vector<16x9xf32>
    %14 = math.exp %13 : vector<16x9xf32>
    %c0_8 = arith.constant 0 : index
    %c0_9 = arith.constant 0 : index
    %15 = vector.load %arg5[%c0_8, %c0_9] : memref<9x9xf32, #tpu.memory_space<vmem>>, vector<9x9xf32>
    %cst_10 = arith.constant dense<0.000000e+00> : vector<16x9xf32>
    %16 = tpu.matmul %14, %15, %cst_10 {dimension_numbers = #tpu.dot_dimension_numbers<[1], [0], [0], [1], [0, 0, 1, 1], [], []>} : vector<16x9xf32>, vector<9x9xf32>, vector<16x9xf32> -> vector<16x9xf32>
    %17 = vector.extract_strided_slice %16 {offsets = [0, 8], sizes = [16, 1], strides = [1, 1]} : vector<16x9xf32> to vector<16x1xf32>
    %18 = arith.mulf %9, %17 : vector<16x1xf32>
    %19 = vector.broadcast %18 : vector<16x1xf32> to vector<16x9xf32>
    %20 = arith.cmpf olt, %16, %19 : vector<16x9xf32>
    %cst_11 = arith.constant 0.000000e+00 : f32
    %21 = vector.broadcast %cst_11 : f32 to vector<16x9xf32>
    %22 = arith.cmpf oeq, %16, %21 : vector<16x9xf32>
    %23 = arith.ori %20, %22 : vector<16x9xi1>
    %24 = arith.extui %23 : vector<16x9xi1> to vector<16x9xi32>
    %25 = arith.sitofp %24 : vector<16x9xi32> to vector<16x9xf32>
    %cst_12 = arith.constant dense<0.000000e+00> : vector<16xf32>
    %26 = vector.multi_reduction <add>, %25, %cst_12 [1] : vector<16x9xf32> to vector<16xf32>
    %27 = vector.shape_cast %26 : vector<16xf32> to vector<16x1xf32>
    %28 = tpu.iota {dimensions = array<i32: 1>} : vector<16x11xi32>
    %c10_i32 = arith.constant 10 : i32
    %29 = vector.broadcast %c10_i32 : i32 to vector<16x11xi32>
    %30 = arith.cmpi eq, %28, %29 : vector<16x11xi32>
    %31 = vector.shape_cast %27 : vector<16x1xf32> to vector<16x1xf32>
    %32 = vector.broadcast %31 : vector<16x1xf32> to vector<16x11xf32>
    %33 = arith.select %30, %32, %7 : vector<16x11xi1>, vector<16x11xf32>
    %c0_13 = arith.constant 0 : index
    %c0_14 = arith.constant 0 : index
    %34 = vector.load %arg6[%c0_13, %c0_14] : memref<16x11xf32, #tpu.memory_space<vmem>>, vector<16x11xf32>
    tpu.vector_store %arg6[%c0_13, %c0_14], %33 {strides = array<i32>} : memref<16x11xf32, #tpu.memory_space<vmem>>, vector<16x11xf32>,
    return
  }
  func.func @transform_0(%arg0: i32) -> (i32, i32) {
    %c0_i32 = arith.constant 0 : i32
    %c0_i32_0 = arith.constant 0 : i32
    return %arg0, %c0_i32 : i32, i32
  }
  func.func @transform_1(%arg0: i32) -> (i32, i32) {
    %c0_i32 = arith.constant 0 : i32
    %c0_i32_0 = arith.constant 0 : i32
    return %arg0, %c0_i32 : i32, i32
  }
  func.func @transform_2(%arg0: i32) -> (i32, i32) {
    %c0_i32 = arith.constant 0 : i32
    %c0_i32_0 = arith.constant 0 : i32
    %c0_i32_1 = arith.constant 0 : i32
    return %c0_i32, %c0_i32_0 : i32, i32
  }
  func.func @transform_3(%arg0: i32) -> (i32, i32) {
    %c0_i32 = arith.constant 0 : i32
    %c0_i32_0 = arith.constant 0 : i32
    %c0_i32_1 = arith.constant 0 : i32
    return %c0_i32, %c0_i32_0 : i32, i32
  }
  func.func @transform_4(%arg0: i32) -> (i32, i32) {
    %c0_i32 = arith.constant 0 : i32
    %c0_i32_0 = arith.constant 0 : i32
    %c0_i32_1 = arith.constant 0 : i32
    return %c0_i32, %c0_i32_0 : i32, i32
  }
  func.func @transform_5(%arg0: i32) -> (i32, i32) {
    %c0_i32 = arith.constant 0 : i32
    %c0_i32_0 = arith.constant 0 : i32
    return %arg0, %c0_i32 : i32, i32
  }
}

</mosaic_0001>

<bundles_post_ra>
// kernel: grid_shooting_forward.1
= control target key start
LH: loop header
LB: loop body
LE: loop exit
PB: predicated region body
PF: predicated region fallthrough
CT: control target
= control target key end

     0   :  { %vm36_vm0 = vcmask 457728   ;;  %vm122_vm1 = vcmask 80904   ;;  %vm148_vm2 = vcmask 1040384   ;;  %vm349_vm3 = vmmov 1   ;;  %s450_s2 = inlined_call_operand.vmem [shape: f32[56,11], index: 2, kind: input, shape index: {}]   ;;  %s451_s0 = inlined_call_operand.vmem [shape: f32[16,56], index: 0, kind: input, shape index: {}]   ;;  %s452_s3 = inlined_call_operand.vmem [shape: f32[1,11], index: 3, kind: input, shape index: {}]   ;;  %s453_s1 = inlined_call_operand.vmem [shape: f32[16,11], index: 1, kind: input, shape index: {}]   ;;  %s454_s4 = inlined_call_operand.vmem [shape: f32[9,9], index: 4, kind: input, shape index: {}]   ;;  %s455_s5 = inlined_call_operand.vmem [shape: f32[16,11], index: 5, kind: output, shape index: {}]  }
   0x1   :  { %v22_v0 = vld [vmem:[%s450_s2] sm:$0xff]  ;;  %v23_v1 = vld [vmem:[%s450_s2 + $0x8] sm:$0xff]  ;;  %v24_v2 = vld [vmem:[%s450_s2 + $0x10] sm:$0xff]  ;;  %vm143_vm5 = vcmask 72704   ;;  %v351_v36 = vmov 10   ;;  %v353_v44 = vmov 0.0   ;;  %v263_v50 = vlaneseq }
   0x2   :  { %v320_v3 = vpack.c.bf16 %v23_v1, %v22_v0  ;;  %v25_v4 = vld [vmem:[%s450_s2 + $0x18] sm:$0xff]  ;;  %v26_v6 = vld [vmem:[%s450_s2 + $0x20] sm:$0xff]  ;;  %v27_v7 = vld [vmem:[%s450_s2 + $0x28] sm:$0xff]  ;;  %343 = vset.pattern.permute.xlu1 %v351_v36  ;;  %344 = vset.pattern.permute.xlu0 %v351_v36  ;;  %vm268_vm13 = vcmask 89088  }
   0x3   :  { %v324_v5 = vpack.c.bf16 %v25_v4, %v24_v2  ;;  %v20_v8 = vld [vmem:[%s451_s0] sm:$0xff]  ;;  %v328_v9 = vpack.c.bf16 %v27_v7, %v26_v6  ;;  %v28_v10 = vld [vmem:[%s450_s2 + $0x30] sm:$0xff]  ;;  %v21_v11 = vld [vmem:[%s451_s0 + $0x8] sm:$0xff]  ;;  %v264_v51 = vand.u32 127, %v263_v50 }
   0x4   :  { %321 = vmatprep.subr.bf16.mxu0 %v320_v3  ;;  %310 = vmatprep.mubr.msk.f32.mxu0 %vm36_vm0, %v20_v8  ;;  %v275_v12 = vld [vmem:[%s452_s3] ss:$0 sm:$0xff]  ;;  %v119_v18 = vld [vmem:[%s453_s1 + $0x8] sm:$0xff]  ;;  %vm333_vm4 = vmpackc.low %vm148_vm2, %vm349_vm3 }
   0x5   :  { %323 = vmatpush3.bf16.msra.mxu0 %v320_v3  ;;  %v118_v15 = vld [vmem:[%s453_s1] sm:$0xff]  ;;  %v136_v25 = vld [vmem:[%s454_s4 + $0x8] sm:$0x1]  ;;  %s350_s1 = smov 127   ;;  %vm265_vm12 = vcmp.eq.s32.totalorder %v264_v51, 10 }
   0x6   :  { %325 = vmatprep.subr.bf16.mxu0 %v324_v5  ;;  %v135_v24 = vld [vmem:[%s454_s4] sm:$0xff]  ;;  %s352_s4 = smov 2  }
   0x7   :  { %v332_v27 = vpack.c.bf16 %v136_v25, %v135_v24 }
   0x9   :  { %327 = vmatpush3.bf16.msra.mxu0 %v324_v5  ;;  %334 = vmatprep.subr.msk.bf16.mxu1 %vm333_vm4, %v332_v27 }
   0xa   :  { %329 = vmatprep.subr.bf16.mxu0 %v328_v9  ;;  %337 = vmatpush3.bf16.msk.msra.mxu1 %vm333_vm4, %v332_v27 }
   0xd   :  { %331 = vmatpush3.bf16.msra.mxu0 %v328_v9 }
   0xe   :  { %308 = vmatprep.subr.mxu0 %v28_v10 }
  0x11   :  { %309 = vmatpush3.msra.mxu0 %v28_v10 }
  0x12   :  { %311 = vmatmul.mubr.msk.f32.vlgmr.msra.gmra.mrb[0].mxu0 %vm36_vm0, %v21_v11 }
  0xe5   :  { %v312_v13 = vpop.f32.mrb[0].mxu0 }
  0xe6   :  { %v109_v14 = vpop.f32.mrb[1].mxu0  ;;  %v115_v16 = vadd.f32 %v312_v13, %v275_v12 }
  0xe7   :  { %v110_v17 = vadd.f32 %v275_v12, %v109_v14 }
  0xe8   :  { %v424_v20 = vadd.f32 %v119_v18, %v115_v16 }
  0xe9   :  { %v422_v19 = vadd.f32 %v118_v15, %v110_v17 }
  0xea   :  { %v126_v22 = vsel %vm122_vm1, %v424_v20, -inf }
  0xeb   :  { %v123_v21 = vsel %vm122_vm1, %v422_v19, -inf }
  0xec   :  { %124 = vmax.xlane.f32.xlu0 %v123_v21 }
  0xf0   :  { %127 = vmax.xlane.f32.xlu0 %v126_v22 }
 0x179   :  { %v125_v23 = vpop.xlane.xlu0 %124 }
 0x17a   :  { %v129_v26 = vsub.f32 %v422_v19, %v125_v23 }
 0x17c   :  { %v131_v28 = vmul.f32 1.442695, %v129_v26 }
 0x17d   :  { %v128_v29 = vpop.xlane.xlu0 %127 }
 0x17e   :  { %345 = vpow2.f32 %v131_v28  ;;  %v130_v30 = vsub.f32 %v424_v20, %v128_v29 }
 0x180   :  { %v133_v31 = vmul.f32 1.442695, %v130_v30 }
 0x182   :  { %347 = vpow2.f32 %v133_v31 }
 0x188   :  { %v346_v32 = vpop.eup %345 }
 0x189   :  { %139 = vrot.lane.b32.xlu1 %v346_v32, %s350_s1 }
 0x18c   :  { %v348_v33 = vpop.eup %347 }
 0x18d   :  { %141 = vrot.lane.b32.xlu1 %v348_v33, %s350_s1 }
 0x1fb   :  { %v140_v34 = vpop.permute.xlu1 %139 }
 0x1fc   :  { %317 = vmatprep.mubr.msk.f32.mxu1 %vm143_vm5, %v140_v34 }
 0x1ff   :  { %v142_v35 = vpop.permute.xlu1 %141 }
 0x200   :  { %318 = vmatmul.mubr.msk.f32.vlgmr.msra.gmra.mrb[0].mxu1 %vm143_vm5, %v142_v35 }
 0x2d3   :  { %v319_v37 = vpop.f32.mrb[0].mxu1 }
 0x2d4   :  { %231 = vrot.lane.b32.xlu1 %v319_v37, %s352_s4  ;;  %v218_v38 = vpop.f32.mrb[1].mxu1  ;;  %vm250_vm9 = vcmp.eq.f32.partialorder %v319_v37, 0.0 }
 0x2d5   :  { %229 = vrot.lane.b32.xlu0 %v218_v38, %s352_s4  ;;  %vm249_vm6 = vcmp.eq.f32.partialorder %v218_v38, 0.0 }
 0x346   :  { %v232_v41 = vpop.permute.xlu1 %231 }
 0x347   :  { %v230_v39 = vpop.permute.xlu0 %229  ;;  %v236_v42 = vmul.f32 %v232_v41, %v424_v20 }
 0x348   :  { %v235_v40 = vmul.f32 %v230_v39, %v422_v19 }
 0x34a   :  { %239 = vperm.xlu1 %343, %v235_v40  }
 0x34e   :  { %244 = vperm.xlu1 %343, %v236_v42  }
 0x3c9   :  { %v240_v43 = vpop.permute.xlu1 %239 }
 0x3ca   :  { %vm247_vm7 = vcmp.lt.f32.partialorder %v218_v38, %v240_v43 }
 0x3cb   :  { %vm251_vm8 = vmor %vm247_vm7, %vm249_vm6 }
 0x3cc   :  { %v281_v45 = vsel %vm251_vm8, 1.0, %v353_v44 }
 0x3cd   :  { %v245_v46 = vpop.permute.xlu1 %244  ;;  %v257_v47 = vsel %vm143_vm5, %v281_v45, 0.0 }
 0x3ce   :  { %vm248_vm10 = vcmp.lt.f32.partialorder %v319_v37, %v245_v46  ;;  %258 = vadd.xlane.f32.xlu1 %v257_v47 }
 0x3cf   :  { %vm252_vm11 = vmor %vm248_vm10, %vm250_vm9 }
 0x3d0   :  { %v282_v48 = vsel %vm252_vm11, 1.0, %v353_v44 }
 0x3d1   :  { %v260_v49 = vsel %vm143_vm5, %v282_v48, 0.0 }
 0x3d2   :  { %261 = vadd.xlane.f32.xlu0 %v260_v49 }
 0x45b   :  { %v259_v52 = vpop.xlane.xlu1 %258 }
 0x45c   :  { %v266_v53 = vsel %vm265_vm12, %v259_v52, %v422_v19 }
 0x45d   :  { %269 = vst.msk [vmem:[%s455_s5] sm:$0xff] %vm268_vm13, %v266_v53 }
 0x45f   :  { %v262_v54 = vpop.xlane.xlu0 %261 }
 0x460   :  { %v267_v55 = vsel %vm265_vm12, %v262_v54, %v424_v20 }
 0x461   :  { %270 = vst.msk [vmem:[%s455_s5 + $0x8] sm:$0xff] %vm268_vm13, %v267_v55 }

</bundles_post_ra>
